<compile_context>
chip_gen: v6e
topology: v6e:2x2x1
jax: 0.10.0
libtpu: 0.0.40
codegen_flags: <defaults>
</compile_context>

<pallas_src>
import functools

import jax
import jax.numpy as jnp
from jax.experimental import pallas as pl
from jax.experimental.pallas import tpu as pltpu


# Explicit, generation-safe VMEM cap (v5e/v6e have 128 MiB, v7x only 64 MiB).
# With the channels-major layout even 8192-wide tiles stay far below this; on
# v5e/v6e it could be raised to 64 MiB if DMA ever becomes exposed.
_VMEM_LIMIT = 32 * 1024 * 1024


def _round_up(x, m):
    return ((x + m - 1) // m) * m


# ----------------------------------------------------------------------------
# Fused FFNet kernel (channels-major): rgb enc + pt enc + block-diag layer 2
# + fuse + head.  All operands are (C, tn): C on sublanes, pixels on lanes.
# ----------------------------------------------------------------------------
def _ffnet_fused_kernel(rgb_ref, pf_ref,
                        wr1, br1, wp1, bp1,
                        w2, b2, wf, bf, wo, bo,
                        o_ref):
    f32 = jnp.float32
    r1 = jnp.maximum(
        jnp.dot(wr1[...], rgb_ref[0], preferred_element_type=f32) + br1[...], 0.0)
    p1 = jnp.maximum(
        jnp.dot(wp1[...], pf_ref[0], preferred_element_type=f32) + bp1[...], 0.0)
    # (2h, tn) concat along sublanes (h is a multiple of 8 -> aligned, cheap).
    x = jnp.concatenate([r1, p1], axis=0)
    # Block-diagonal layer-2 (rgb/pt) in a single matmul; fuse is then one matmul.
    h = jnp.maximum(jnp.dot(w2[...], x, preferred_element_type=f32) + b2[...], 0.0)
    f = jnp.maximum(jnp.dot(wf[...], h, preferred_element_type=f32) + bf[...], 0.0)
    o_ref[0] = jnp.dot(wo[...], f, preferred_element_type=f32) + bo[...]


def ffnet_fused(params, rgb_cm, pf_cm, *, col_tile=8192):
    """rgb_cm: (B, 3, N) ; pf_cm: (B, gc+1, N) ; returns (B, outc, N)."""
    b, _, n = rgb_cm.shape
    cp = pf_cm.shape[1]
    hid = params["rgb_w1"].shape[1]
    outc = params["out_w"].shape[1]

    # Lane tile: multiple of 128 (pad pixel axis if needed, slice afterwards).
    tn = _round_up(min(col_tile, n), 128)
    n_pad = _round_up(n, tn)
    if n_pad != n:
        rgb_cm = jnp.pad(rgb_cm, ((0, 0), (0, 0), (0, n_pad - n)))
        pf_cm = jnp.pad(pf_cm, ((0, 0), (0, 0), (0, n_pad - n)))

    def col(v):
        return v.reshape(-1, 1)

    # Transposed weights: y = W^T @ x with x (Cin, tn).
    w2 = jnp.zeros((2 * hid, 2 * hid), jnp.float32)
    w2 = w2.at[:hid, :hid].set(params["rgb_w2"].T)
    w2 = w2.at[hid:, hid:].set(params["pt_w2"].T)
    b2 = jnp.concatenate([params["rgb_b2"], params["pt_b2"]]).reshape(-1, 1)

    weights = [
        params["rgb_w1"].T, col(params["rgb_b1"]),
        params["pt_w1"].T, col(params["pt_b1"]),
        w2, b2,
        params["fuse_w"].T, col(params["fuse_b"]),   # fuse order = [rgb_feat; pt_feat]
        params["out_w"].T, col(params["out_b"]),
    ]
    # Weights stay VMEM-resident across all tiles (constant index_map).
    w_specs = [pl.BlockSpec(w.shape, lambda bi, j: (0, 0)) for w in weights]

    out = pl.pallas_call(
        _ffnet_fused_kernel,
        out_shape=jax.ShapeDtypeStruct((b, outc, n_pad), jnp.float32),
        grid=(b, n_pad // tn),
        in_specs=[pl.BlockSpec((1, 3, tn), lambda bi, j: (bi, 0, j)),
                  pl.BlockSpec((1, cp, tn), lambda bi, j: (bi, 0, j))] + w_specs,
        out_specs=pl.BlockSpec((1, outc, tn), lambda bi, j: (bi, 0, j)),
        compiler_params=pltpu.CompilerParams(
            dimension_semantics=("parallel", "parallel"),
            vmem_limit_bytes=_VMEM_LIMIT),
    )(rgb_cm, pf_cm, *weights)
    return out[:, :, :n]


# ----------------------------------------------------------------------------
# Pairwise nearest-neighbor score (per batch, query-tiled).
# score[i, j] = 2 * <x_i, x_j> - |x_j|^2  (== -dist + const-per-row, so top_k
# ordering is identical; the per-row |x_i|^2 term is dropped on purpose).
# ----------------------------------------------------------------------------
def _pdist_kernel(q_ref, k_ref, o_ref):
    q = q_ref[0]                                              # (tq, 3)   queries
    kk = k_ref[0]                                             # (3, nsp)  keys, channels-major
    g = jnp.dot(q, kk, preferred_element_type=jnp.float32)    # (tq, nsp)
    sn_j = jnp.sum(kk * kk, axis=0, keepdims=True)            # (1, nsp) lane row-broadcast
    o_ref[0] = 2.0 * g - sn_j


def pallas_pdist(xyz_cm):
    """xyz_cm: (B, 3, nsp). Returns (B, nsp, nsp) neighbor score (larger = nearer)."""
    b, _, nsp = xyz_cm.shape
    # Tiny (B,3,nsp) transpose for the query operand (keeps the matmul in
    # standard, non-transposed dot form inside the kernel).
    xyz_rm = jnp.transpose(xyz_cm, (0, 2, 1))                 # (B, nsp, 3)
    # Query tiling gives v7x's two TensorCores parallel slack even at B<=2.
    tq = 128 if (nsp >= 128 and nsp % 128 == 0) else nsp
    return pl.pallas_call(
        _pdist_kernel,
        out_shape=jax.ShapeDtypeStruct((b, nsp, nsp), jnp.float32),
        grid=(b, nsp // tq),
        in_specs=[pl.BlockSpec((1, tq, 3), lambda i, q: (i, q, 0)),
                  pl.BlockSpec((1, 3, nsp), lambda i, q: (i, 0, 0))],
        out_specs=pl.BlockSpec((1, tq, nsp), lambda i, q: (i, q, 0)),
        compiler_params=pltpu.CompilerParams(
            dimension_semantics=("parallel", "parallel"),
            vmem_limit_bytes=_VMEM_LIMIT),
    )(xyz_rm, xyz_cm)


# ----------------------------------------------------------------------------
# Fused EdgeConv (channels-major): edge features + MLP + ReLU + max over knn.
# All knn matmuls are batched into one (gc,3)@(3,knn*nsp) matmul; the
# centre-term is handled by linearity, the knn max-reduction stays on the VPU.
# ----------------------------------------------------------------------------
def _edgeconv_kernel(nbr_ref, xyz_ref, wd_ref, wc_ref, b_ref, o_ref, *, knn, nsp):
    f32 = jnp.float32
    ctr = xyz_ref[0]                                                       # (3, nsp)
    nbrs = nbr_ref[0]                                                      # (3, knn*nsp)
    # edge = [nbr - ctr, ctr];  W @ edge = Wd @ nbr + (Wc - Wd) @ ctr + b
    base = jnp.dot(wc_ref[...], ctr, preferred_element_type=f32) + b_ref[...]   # (gc, nsp)
    off = base - jnp.dot(wd_ref[...], ctr, preferred_element_type=f32)          # (gc, nsp)
    nproj = jnp.dot(wd_ref[...], nbrs, preferred_element_type=f32)              # (gc, knn*nsp)
    acc = jnp.maximum(nproj[:, 0:nsp] + off, 0.0)
    for k in range(1, knn):                      # knn is small & static -> unrolled, VPU max
        acc = jnp.maximum(acc, jnp.maximum(nproj[:, k * nsp:(k + 1) * nsp] + off, 0.0))
    o_ref[0] = acc


def pallas_edgeconv(neighbors_cm, xyz_cm, wd_t, wc_t, bias_col, knn):
    """neighbors_cm: (B, 3, knn*nsp) ; xyz_cm: (B, 3, nsp) -> (B, gc, nsp)."""
    b, _, nsp = xyz_cm.shape
    gc = wd_t.shape[0]
    return pl.pallas_call(
        functools.partial(_edgeconv_kernel, knn=knn, nsp=nsp),
        out_shape=jax.ShapeDtypeStruct((b, gc, nsp), jnp.float32),
        grid=(b,),
        in_specs=[
            pl.BlockSpec((1, 3, knn * nsp), lambda i: (i, 0, 0)),
            pl.BlockSpec((1, 3, nsp), lambda i: (i, 0, 0)),
            pl.BlockSpec(wd_t.shape, lambda i: (0, 0)),
            pl.BlockSpec(wc_t.shape, lambda i: (0, 0)),
            pl.BlockSpec(bias_col.shape, lambda i: (0, 0)),
        ],
        out_specs=pl.BlockSpec((1, gc, nsp), lambda i: (i, 0, 0)),
        compiler_params=pltpu.CompilerParams(
            dimension_semantics=("parallel",),
            vmem_limit_bytes=_VMEM_LIMIT),
    )(neighbors_cm, xyz_cm, wd_t, wc_t, bias_col)


# ----------------------------------------------------------------------------
# Model glue (plain JAX; all hot matmuls / reductions live in the kernels)
# ----------------------------------------------------------------------------
def point_sampling(point_cloud, nsp):
    # TODO(synk): original PointSampling not provided; deterministic uniform-stride
    # pixel sampling (static stride -> implemented with slicing, no gather).
    b, c, h, w = point_cloud.shape
    stride = (h * w) // nsp
    pc_flat = point_cloud.reshape(b, c, h * w)
    points = pc_flat[:, :, :nsp * stride].reshape(b, c, nsp, stride)[:, :, :, 0]  # (B, 3, nsp)
    idx = jnp.broadcast_to(jnp.arange(nsp, dtype=jnp.int32) * stride, (b, nsp))
    return points, idx


def dgcnn_forward(params, points, knn):
    # points: (B, 3, nsp) channels-major
    b, _, nsp = points.shape
    gc = params["dg_w"].shape[1]
    score = pallas_pdist(points)                                 # (B, nsp, nsp)
    # TODO(synk): top-k neighbor selection + data-dependent gather have no clean
    # Pallas equivalent here; they stay in XLA (tiny tensors).
    _, idx = jax.lax.top_k(score, knn)                           # (B, nsp, knn)
    idx_t = jnp.transpose(idx, (0, 2, 1))                        # (B, knn, nsp)
    nbrs = jax.vmap(lambda xt, it: xt[:, it])(points, idx_t)     # (B, 3, knn, nsp)
    nbrs = nbrs.reshape(b, 3, knn * nsp)                         # k-major lane order
    return pallas_edgeconv(nbrs, points,
                           params["dg_w"][:3].T, params["dg_w"][3:].T,
                           params["dg_b"].reshape(gc, 1), knn)   # (B, gc, nsp)


def project_map_cm(feats, b, c, h, w, nsp, stride):
    # TODO(synk): original PrjectMap not provided; places point features on a
    # dense zero map at static uniform-stride pixel positions (no scatter).
    # feats: (B, C, nsp) -> (B, C, H*W), column i at flat pixel i*stride.
    block = jnp.concatenate(
        [feats[:, :, :, None], jnp.zeros((b, c, nsp, stride - 1), feats.dtype)], axis=3)
    dense = block.reshape(b, c, nsp * stride)
    tail = h * w - nsp * stride
    if tail:
        dense = jnp.concatenate([dense, jnp.zeros((b, c, tail), feats.dtype)], axis=2)
    return dense                                                 # (B, C, H*W)


def gaenet_forward(params, rgb, point_cloud, cfg, is_test=False):
    b, _, h, w = point_cloud.shape
    nsp, knn, gc = cfg["nsp"], cfg["knn"], cfg["gchannel"]
    stride = (h * w) // nsp

    # --- PointForward ---
    points, _ = point_sampling(point_cloud, nsp)                 # (B, 3, nsp)
    dg_out = dgcnn_forward(params, points, knn)                  # (B, gc, nsp)
    feats = jnp.concatenate([dg_out, points[:, 1:2, :]], axis=1)  # (B, gc+1, nsp)
    # TODO(synk): the dense pf map is mostly zeros; folding the zero-input pt
    # branch into the fuse bias would remove this HBM round-trip, but it is
    # only valid under the uniform-stride projection stub, so it is kept.
    pf_map = project_map_cm(feats, b, gc + 1, h, w, nsp, stride)  # (B, gc+1, H*W)

    # --- backbone (fused FFNet, one kernel, channels-major: no transposes) ---
    # TODO(synk): original FFNet not provided; simplified two-branch 1x1-conv
    # encoder + fusion head consistent with FFNet(3, gchannel, out_channel).
    rgb_cm = rgb.reshape(b, 3, h * w)                            # NCHW is already channels-major
    o = ffnet_fused(params, rgb_cm, pf_map,
                    col_tile=cfg.get("col_tile", 8192))          # (B, outc, H*W)
    outc = params["out_w"].shape[1]
    return o.reshape(b, outc, h, w)                              # NCHW


# ----------------------------------------------------------------------------
# Deterministic parameter init (normal(0, 0.02) weights, zero biases)
# ----------------------------------------------------------------------------
def init_params(key, cfg):
    gc, hid, outc = cfg["gchannel"], cfg["hidden"], cfg["out_channel"]
    shapes = {
        "dg_w": (6, gc), "dg_b": (gc,),
        "rgb_w1": (3, hid), "rgb_b1": (hid,),
        "rgb_w2": (hid, hid), "rgb_b2": (hid,),
        "pt_w1": (gc + 1, hid), "pt_b1": (hid,),
        "pt_w2": (hid, hid), "pt_b2": (hid,),
        "fuse_w": (2 * hid, hid), "fuse_b": (hid,),
        "out_w": (hid, outc), "out_b": (outc,),
    }
    params = {}
    names = sorted(shapes.keys())
    keys = jax.random.split(key, len(names))
    for sub, name in zip(keys, names):
        shp = shapes[name]
        if "_b" in name:
            params[name] = jnp.zeros(shp, jnp.float32)
        else:
            params[name] = 0.02 * jax.random.normal(sub, shp, jnp.float32)
    return params


# ----------------------------------------------------------------------------
if __name__ == "__main__":
    cfg = dict(batch_size=2, nsp=64, knn=8, gchannel=8,
               out_channel=4, hidden=16, H=16, W=16,
               col_tile=128)   # small tile -> exercises the multi-step parallel grid

    key = jax.random.PRNGKey(0)
    k_params, k_rgb, k_pc = jax.random.split(key, 3)
    params = init_params(k_params, cfg)

    # rgb: (B, 3, H, W); pointCloud: (B, 3, H, W) = per-pixel (x, y, z)
    rgb = jax.random.normal(k_rgb, (cfg["batch_size"], 3, cfg["H"], cfg["W"]), jnp.float32)
    point_cloud = jax.random.normal(k_pc, (cfg["batch_size"], 3, cfg["H"], cfg["W"]), jnp.float32)

    out = gaenet_forward(params, rgb, point_cloud, cfg)
    jax.block_until_ready(out)
    assert out.shape == (cfg["batch_size"], cfg["out_channel"], cfg["H"], cfg["W"])
    print("KERNEL_OK")
</pallas_src>

<mosaic_0001>
module attributes {stable_mosaic.version = 11 : i64} {
  func.func @_pdist_kernel(%arg0: i32, %arg1: i32, %arg2: memref<1x64x3xf32, #tpu.memory_space<vmem>>, %arg3: memref<1x3x64xf32, #tpu.memory_space<vmem>>, %arg4: memref<1x64x64xf32, #tpu.memory_space<vmem>>) attributes {dimension_semantics = [#tpu.dimension_semantics<parallel>, #tpu.dimension_semantics<parallel>], iteration_bounds = array<i64: 2, 1>, scalar_prefetch = 0 : i64, scratch_operands = 0 : i64, tpu.core_type = #tpu.core_type<tc>, window_params = [{transform_indices = @transform_0, window_bounds = array<i64: 1, 64, 3>}, {transform_indices = @transform_1, window_bounds = array<i64: 1, 3, 64>}, {transform_indices = @transform_2, window_bounds = array<i64: 1, 64, 64>}]} {
    %c0 = arith.constant 0 : index
    %c0_0 = arith.constant 0 : index
    %c0_1 = arith.constant 0 : index
    %0 = vector.load %arg2[%c0, %c0_0, %c0_1] : memref<1x64x3xf32, #tpu.memory_space<vmem>>, vector<1x64x3xf32>
    %1 = vector.shape_cast %0 : vector<1x64x3xf32> to vector<64x3xf32>
    %c0_2 = arith.constant 0 : index
    %c0_3 = arith.constant 0 : index
    %c0_4 = arith.constant 0 : index
    %2 = vector.load %arg3[%c0_2, %c0_3, %c0_4] : memref<1x3x64xf32, #tpu.memory_space<vmem>>, vector<1x3x64xf32>
    %3 = vector.shape_cast %2 : vector<1x3x64xf32> to vector<3x64xf32>
    %cst = arith.constant dense<0.000000e+00> : vector<64x64xf32>
    %4 = tpu.matmul %1, %3, %cst {dimension_numbers = #tpu.dot_dimension_numbers<[1], [0], [0], [1], [0, 0, 1, 1], [], []>} : vector<64x3xf32>, vector<3x64xf32>, vector<64x64xf32> -> vector<64x64xf32>
    %5 = arith.mulf %3, %3 : vector<3x64xf32>
    %cst_5 = arith.constant dense<0.000000e+00> : vector<64xf32>
    %6 = vector.multi_reduction <add>, %5, %cst_5 [0] : vector<3x64xf32> to vector<64xf32>
    %7 = vector.shape_cast %6 : vector<64xf32> to vector<1x64xf32>
    %cst_6 = arith.constant 2.000000e+00 : f32
    %8 = vector.broadcast %cst_6 : f32 to vector<64x64xf32>
    %9 = arith.mulf %8, %4 : vector<64x64xf32>
    %10 = vector.broadcast %7 : vector<1x64xf32> to vector<64x64xf32>
    %11 = arith.subf %9, %10 : vector<64x64xf32>
    %c0_7 = arith.constant 0 : index
    %c0_8 = arith.constant 0 : index
    %c0_9 = arith.constant 0 : index
    %12 = vector.load %arg4[%c0_7, %c0_8, %c0_9] : memref<1x64x64xf32, #tpu.memory_space<vmem>>, vector<1x64x64xf32>
    %13 = vector.shape_cast %12 : vector<1x64x64xf32> to vector<64x64xf32>
    %14 = vector.shape_cast %11 : vector<64x64xf32> to vector<1x64x64xf32>
    tpu.vector_store %arg4[%c0_7, %c0_8, %c0_9], %14 {strides = array<i32>} : memref<1x64x64xf32, #tpu.memory_space<vmem>>, vector<1x64x64xf32>,
    return
  }
  func.func @transform_0(%arg0: i32, %arg1: i32) -> (i32, i32, i32) {
    %c0_i32 = arith.constant 0 : i32
    %c0_i32_0 = arith.constant 0 : i32
    return %arg0, %arg1, %c0_i32 : i32, i32, i32
  }
  func.func @transform_1(%arg0: i32, %arg1: i32) -> (i32, i32, i32) {
    %c0_i32 = arith.constant 0 : i32
    %c0_i32_0 = arith.constant 0 : i32
    %c0_i32_1 = arith.constant 0 : i32
    return %arg0, %c0_i32, %c0_i32_0 : i32, i32, i32
  }
  func.func @transform_2(%arg0: i32, %arg1: i32) -> (i32, i32, i32) {
    %c0_i32 = arith.constant 0 : i32
    %c0_i32_0 = arith.constant 0 : i32
    return %arg0, %arg1, %c0_i32 : i32, i32, i32
  }
}

</mosaic_0001>

<bundles_post_ra>
// kernel: tpu_custom_call.1
= control target key start
LH: loop header
LB: loop body
LE: loop exit
PB: predicated region body
PF: predicated region fallthrough
CT: control target
= control target key end

     0   :  { %7 = vsyncpa [#allocation3], 0  ;;  %s814_s0 = inlined_call_operand.vmem [shape: f32[2,64,3], index: 0, kind: input, shape index: {}]   ;;  %s815_s1 = inlined_call_operand.vmem [shape: f32[2,3,64], index: 1, kind: input, shape index: {}]   ;;  %s816_s2 = inlined_call_operand.hbm [shape: f32[2,64,64], index: 2, kind: output, shape index: {}]  }
   0x1   :  { %9 = vsyncpa [#allocation3 + $0x1], 0  ;;  %s677_s9 = smov 0   ;;  %s679_s10 = smov 0  }
   0x2   :  { %s681_s11 = smov 0   ;;  %s683_s12 = smov 0  }
   0x3   :  { %s685_s13 = smov 0   ;;  %s687_s14 = smov 0  }
   0x4 LB: > { %s474_s15 = sadd.s32 4294967295, %s657_s14   ;;  %s475_s16 = sadd.s32 4294967294, %s657_s14   ;;  %s657_s14 = sphi %s687_s14, %s15_s14   ;;  %s653_s13 = sphi %s685_s13, %s823_s13   ;;  %s649_s12 = sphi %s683_s12, %s822_s12   ;;  %s645_s11 = sphi %s681_s11, %s821_s11   ;;  %s641_s10 = sphi %s679_s10, %s820_s10   ;;  %s637_s9 = sphi %s677_s9, %s819_s9  }
   0x5   : > { %s27_s17 = sadd.s32 1, %s653_s13  ;;  %s90_s18 = sadd.s32 1, %s645_s11 }
   0x6   : > { %p29_p0 = scmp.ge.s32.totalorder %s27_s17, 2  ;;  %p100_p1 = scmp.ne.s32.totalorder %s645_s11, %s641_s10 }
   0x7   : > { %p101_p2 = scmp.eq.s32.totalorder %s474_s15, 1  ;;  %p106_p3 = scmp.ne.s32.totalorder %s641_s10, %s637_s9 }
   0x8   : > { %s825_s17 = smov (%p29_p0, %s27_s17), 0  ;;  %p107_p5 = scmp.eq.s32.totalorder %s475_s16, 1 }
   0x9   : > { %p717_p4 = por %p101_p2, %p100_p1  ;;  %s85_s20 = ssub.s32 %s653_s13, %s825_s17 }
   0xa   : > { %p478_p6 = scmp.ge.s32.totalorder %s657_s14, 1  ;;  %p88_p7 = scmp.eq.s32.totalorder %s85_s20, 0 }
   0xb   : > { %p724_p8 = por %p107_p5, %p106_p3  ;;  %p145_p9 = scmp.lt.s32.totalorder %s657_s14, 3 }
   0xc   : > { %s730_s22 = scalar_select %p88_p7, %s645_s11, %s90_s18  }
   0xd   : > { %p146_p10 = pnand %p478_p6, %p145_p9 }
   0xe   : > { %p176_p11 = scmp.lt.s32.totalorder (!%p146_p10), %s649_s12, 1  ;;  %s172_s4 = sand.u32 (!%p146_p10), 1, %s641_s10  }
   0xf   : > { %149 = sbr.rel (%p146_p10) target bundleno = 245 (0xf5), region = 28  ;;  %s479_s5 = sshll.u32 (!%p146_p10), %s172_s4, 6 }
  0x10   : > { %s174_s6 = scalar_lea.vmem (!%p146_p10), [#allocation2], %s479_s5  ;;  %s498_s7 = sshll.u32 (!%p146_p10), %s649_s12, 10 }
  0x11   : > { %s383_s8 = sshll.u32 (!%p146_p10), %s174_s6, 4  ;;  %s759_s18 = scalar_lea.hbm (!%p146_p10), %s816_s2, %s498_s7  ;;  %s761_s8 = int_to_ptr.vmem [resolvable:$true] %s383_s8 }
  0x12   : > { %s581_s20 = scalar_lea.vmem (!%p146_p10), %s761_s8, 1024 }
  0x13   : > { %p582_p12 = scmp.ne.s32.totalorder (!%p146_p10), %s761_s8, %s581_s20 }
  0x14   : > { %s177_s23 = scalar_select %p176_p11, %s649_s12, 1  ;;  %vm224_vm0 = vcmask 1042432   ;;  %vm199_vm1 = vcmask 23552   ;;  %vm334_vm2 = vcmask 518144   ;;  %vm358_vm3 = vcmask 523264  }
  0x15   : > { %s769_s12 = scalar_lea.sflag [#allocation3], %s172_s4  ;;  %p583_p13 = pnand %p582_p12, %p717_p4 }
  0x16   : > { %s497_s24 = sshll.u32 %s177_s23, 6  ;;  %s482_s25 = sshll.u32 %s177_s23, 2 }
  0x17   : > { %s183_s28 = scalar_lea.vmem %s814_s0, %s497_s24  ;;  %s188_s3 = scalar_lea.vmem %s815_s1, %s482_s25 }
  0x18   : > { %v198_v0 = vld [vmem:[%s188_s3] sm:$0x7]  ;;  %v191_v3 = vld [vmem:[%s183_s28 + $0x8] sm:$0xff]  ;;  %v192_v5 = vld [vmem:[%s183_s28 + $0x10] sm:$0xff]  ;;  %p584_p0 = pneg %p583_p13  ;;  %s659_s23 = smov [#allocation2]  }
  0x19   : > { %v190_v1 = vld [vmem:[%s183_s28] sm:$0xff]  ;;  %508 = vmatprep.subr.msk.mxu0 %vm224_vm0, %v198_v0  ;;  %522 = vmatprep.subr.msk.mxu1 %vm224_vm0, %v198_v0  ;;  %v195_v4 = vld [vmem:[%s183_s28 + $0x28] sm:$0xff]  ;;  %v196_v6 = vld [vmem:[%s183_s28 + $0x30] sm:$0xff]  ;;  %v333_v9 = vmul.f32 %v198_v0, %v198_v0  ;;  %s585_s24 = sshll.u32 %s659_s23, 4  ;;  %s586_s24 = int_to_ptr.vmem [resolvable:$false] %s585_s24 }
  0x1a   : > { %v194_v2 = vld [vmem:[%s183_s28 + $0x20] sm:$0xff]  ;;  %509 = vmatpush3.msk.msra.mxu0 %vm224_vm0, %v198_v0  ;;  %523 = vmatpush3.msk.msra.mxu1 %vm224_vm0, %v198_v0  ;;  %v193_v7 = vld [vmem:[%s183_s28 + $0x18] sm:$0xff]  ;;  %s587_s25 = scalar_lea.vmem %s586_s24, 2048  ;;  %p588_p1 = scmp.lt.s32.totalorder %s761_s8, %s586_s24 }
  0x1b   : > { %510 = vmatprep.mubr.msk.f32.mxu0 %vm199_vm1, %v190_v1  ;;  %516 = vmatprep.mubr.msk.f32.mxu1 %vm199_vm1, %v194_v2  ;;  %v197_v8 = vld [vmem:[%s183_s28 + $0x38] sm:$0xff]  ;;  %v335_v10 = vsel %vm334_vm2, %v333_v9, 0.0  ;;  %p589_p2 = scmp.lt.s32.totalorder %s587_s25, %s581_s20 }
  0x1c   : > { %511 = vmatmul.mubr.msk.f32.vlgmr.msra.gmra.mxu0 %vm199_vm1, %v191_v3  ;;  %517 = vmatmul.mubr.msk.f32.vlgmr.msra.gmra.mxu1 %vm199_vm1, %v195_v4  ;;  %v336_v11 = vrot.slane %v335_v10, 4 }
  0x1d   : > { %513 = vmatprep.mubr.msk.f32.mxu0 %vm199_vm1, %v192_v5  ;;  %519 = vmatprep.mubr.msk.f32.mxu1 %vm199_vm1, %v196_v6  ;;  %p590_p3 = por %p589_p2, %p588_p1 }
  0x1e   : > { %v337_v12 = vadd.f32 %v336_v11, %v335_v10 }
  0x1f   : > { %p591_p5 = pnand %p590_p3, %p584_p0 }
  0x20   : > { %514 = vmatmul.mubr.msk.f32.gmra.mxu0 %vm199_vm1, %v193_v7  ;;  %520 = vmatmul.mubr.msk.f32.gmra.mxu1 %vm199_vm1, %v197_v8  ;;  %v338_v13 = vrot.slane %v337_v12, 2 }
  0x22   : > { %v339_v14 = vadd.f32 %v338_v13, %v337_v12 }
  0x24   : > { %v340_v15 = vrot.slane %v339_v14, 1 }
  0x26   : > { %v341_v16 = vadd.f32 %v340_v15, %v339_v14 }
  0xdc   : > { %v512_v17 = vpop.f32.mrf.mxu0  ;;  %v518_v18 = vpop.f32.mrf.mxu1 }
  0xdd   : > { %v343_v19 = vmul.f32 2.0, %v512_v17  ;;  %v347_v20 = vmul.f32 2.0, %v518_v18 }
  0xde   : > { %v294_v21 = vpop.f32.mrf.mxu0  ;;  %v314_v22 = vpop.f32.mrf.mxu1 }
  0xdf   : > { %v351_v23 = vsub.f32 %v343_v19, %v341_v16  ;;  %v355_v24 = vsub.f32 %v347_v20, %v341_v16  ;;  %v342_v25 = vmul.f32 2.0, %v294_v21  ;;  %v346_v26 = vmul.f32 2.0, %v314_v22 }
  0xe0   : > { %v515_v27 = vpop.f32.mrf.mxu0  ;;  %v521_v28 = vpop.f32.mrf.mxu1 }
  0xe1   : > { %360 = vst.msk [vmem:[%s174_s6 + $0x8] sm:$0xff] %vm358_vm3, %v351_v23  ;;  %364 = vst.msk [vmem:[%s174_s6 + $0x28] sm:$0xff] %vm358_vm3, %v355_v24  ;;  %v350_v29 = vsub.f32 %v342_v25, %v341_v16  ;;  %v354_v30 = vsub.f32 %v346_v26, %v341_v16  ;;  %v345_v31 = vmul.f32 2.0, %v515_v27  ;;  %v349_v32 = vmul.f32 2.0, %v521_v28 }
  0xe2   : > { %v304_v33 = vpop.f32.mrf.mxu0  ;;  %v324_v34 = vpop.f32.mrf.mxu1 }
  0xe3   : > { %359 = vst.msk [vmem:[%s174_s6] sm:$0xff] %vm358_vm3, %v350_v29  ;;  %363 = vst.msk [vmem:[%s174_s6 + $0x20] sm:$0xff] %vm358_vm3, %v354_v30  ;;  %v353_v35 = vsub.f32 %v345_v31, %v341_v16  ;;  %v357_v36 = vsub.f32 %v349_v32, %v341_v16  ;;  %v344_v37 = vmul.f32 2.0, %v304_v33  ;;  %v348_v38 = vmul.f32 2.0, %v324_v34 }
  0xe5   : > { %362 = vst.msk [vmem:[%s174_s6 + $0x18] sm:$0xff] %vm358_vm3, %v353_v35  ;;  %366 = vst.msk [vmem:[%s174_s6 + $0x38] sm:$0xff] %vm358_vm3, %v357_v36  ;;  %v352_v39 = vsub.f32 %v344_v37, %v341_v16  ;;  %v356_v40 = vsub.f32 %v348_v38, %v341_v16 }
  0xe7   : > { %361 = vst.msk [vmem:[%s174_s6 + $0x10] sm:$0xff] %vm358_vm3, %v352_v39  ;;  %365 = vst.msk [vmem:[%s174_s6 + $0x30] sm:$0xff] %vm358_vm3, %v356_v40 }
  0xe8   : > { %594 = shalt.err (!%p591_p5)
}
  0xe9   : > { %s595_s26 = scalar_lea.hbm %s759_s18, 1024  ;;  %s599_s29 = scalar_lea.hbm %s816_s2, 2048 }
  0xea   : > { %p596_p6 = scmp.ne.s32.totalorder %s759_s18, %s595_s26  ;;  %p600_p10 = scmp.lt.s32.totalorder %s759_s18, %s816_s2 }
  0xeb   : > { %p601_p11 = scmp.lt.s32.totalorder %s599_s29, %s595_s26 }
  0xec   : > { %p597_p7 = pnand %p596_p6, %p717_p4 }
  0xed   : > { %p602_p12 = por %p601_p11, %p600_p10 }
  0xee   : > { %p598_p9 = pneg %p597_p7 }
  0xf0   : > { %p603_p13 = pnand %p602_p12, %p598_p9 }
  0xf2   : > { %606 = shalt.err (!%p603_p13)
}
  0xf3   : > { %s660_s4 = smov 128   ;;  %s661_s5 = smov 8  }
  0xf4   : > { %524 = dma.vmem_to_hbm [thread:$0]  (%p717_p4), %s761_s8, 1024, %s759_s18, %s769_s12, %s660_s4, %s660_s4, %s661_s5  }
  0xf5 PF: > { %p530_p0 = scmp.ge.s32.totalorder %s657_s14, 2  ;;  %s398_s6 = sand.u32 1, %s637_s9  }
  0xf6   : > { %s399_s7 = scalar_lea.sflag [#allocation3], %s398_s6 }
  0xf7   : > { %p527_p1 = pnand %p530_p0, %p724_p8 }
  0xf9   : > { %p528_p2 = pneg %p527_p1 }
  0xfb   : > { %632 = dma.done.wait (%p528_p2), %s399_s7, 1024  }
  0xfc   : > { %634 = vsyncadd (%p528_p2), %s399_s7, 4294966272  ;;  %s15_s14 = sadd.s32 1, %s657_s14   ;;  %s819_s9 = smov %s641_s10 }
  0xfd   : > { %p12_p3 = scmp.ge.s32.totalorder %s15_s14, 4   ;;  %s820_s10 = smov %s645_s11 }
  0xfe   : > { %s821_s11 = smov %s730_s22  ;;  %s822_s12 = smov %s653_s13 }
  0xff   : > { %s823_s13 = smov %s825_s17  ;;  %14 = sbr.rel (!%p12_p3) target bundleno = 4 (0x4), region = 66 }
 0x104   :  { %404 = vsyncpa [#allocation3], 1 }
 0x105   :  { %406 = vsyncpa [#allocation3 + $0x1], 1 }

</bundles_post_ra>
